<compile_context>
chip_gen: v7x
topology: tpu7x:2x2x1
jax: 0.10.0
libtpu: 0.0.40
codegen_flags: <defaults>
</compile_context>

<pallas_src>
import jax
import jax.numpy as jnp
import numpy as np
from jax.experimental import pallas as pl
from jax.experimental.pallas import tpu as pltpu

# ---------------- model dimensions (synthetic, deterministic) -----------------
B = 2           # batch
N = 16          # points per cloud
F = 32          # backbone feature dim
DF = 16         # voting feature-offset dim
H = 16          # cluster descriptor dim
HB = 64         # backbone hidden
HS = 32         # scoring hidden
SF = 3 + 3 + 1 + H + F      # scoring-head input feature dim = 55
VOUT = 3 + DF + 1           # voting-head useful outputs (beta column dropped) = 20

# ------------------------- packed-parameter layout -----------------------------
# Every piece lives at a static (row_off, col_off, rows, cols) inside ONE
# (80, 128) f32 slab.  Biases share a single 8x128 tile; large weights are
# co-located along the lane axis.  Row starts are 8-aligned; lane slices within
# the 128-lane tile are cheap lane selects.
PARAM_COLS = 128
PARAM_ROWS = 80
PARAM_LAYOUT = {
    # name:   (row_off, col_off, rows, cols)
    "bb1":    (0,   0, 1, HB),
    "bb2":    (0,  64, 1, F),
    "bv":     (0,  96, 1, VOUT),
    "bhk":    (1,   0, 1, H),
    "bs1":    (1,  16, 1, HS),
    "ws2t":   (1,  48, 1, HS),
    "ws1rho": (1,  80, 1, HS),
    "bs2":    (1, 112, 1, 1),
    "wb1f":   (8,   0, 3, HB),            # backbone L1 with concat([pc,pc]) folded
    "ws1mu":  (8,  64, 3, HS),            # scoring-head mu rows
    "wb2":    (16,  0, HB, F),
    "wv":     (16, 32, F, VOUT),          # merged voting head (dx | df | rho)
    "whk":    (16, 52, DF, H),
    "ws1pkg": (16, 68, 3 + H + F, HS),    # scoring rows stacked as [pc | h_k | g]
}


def pack_params(params):
    """Fold / split reference weights and pack them into one VMEM-friendly slab."""
    (wb1, bb1, wb2, bb2, wv, bv, whk, bhk, ws1, bs1, ws2, bs2) = params
    pieces = {
        "wb1f": wb1[0:3] + wb1[3:6],                # concat([pc, pc]) folded into K=3
        "bb1": bb1.reshape(1, -1),
        "wb2": wb2,
        "bb2": bb2.reshape(1, -1),
        "wv": wv[:, 0:VOUT],                        # drop unused beta column
        "bv": bv[:, 0:VOUT].reshape(1, -1),
        "whk": whk,
        "bhk": bhk.reshape(1, -1),
        "ws1pkg": jnp.concatenate(                  # rows for [pc | h_k | g]
            [ws1[0:3], ws1[7:7 + H], ws1[7 + H:7 + H + F]], axis=0),
        "ws1mu": ws1[3:6],
        "ws1rho": ws1[6:7],
        "bs1": bs1.reshape(1, -1),
        "ws2t": ws2.T,                              # (1, HS) row for lane reduction
        "bs2": bs2.reshape(1, -1),
    }
    packed = jnp.zeros((PARAM_ROWS, PARAM_COLS), jnp.float32)
    for name, (r0, c0, r, c) in PARAM_LAYOUT.items():
        packed = packed.at[r0:r0 + r, c0:c0 + c].set(pieces[name].astype(jnp.float32))
    return packed


# ------------------------------- Pallas kernel --------------------------------
def detector_kernel(pc_ref, wp_ref, scores_ref):
    bt, n, _ = pc_ref.shape
    m = bt * n

    def w(name):                                   # static slice of the packed slab
        r0, c0, r, c = PARAM_LAYOUT[name]
        return wp_ref[r0:r0 + r, c0:c0 + c]

    pc = pc_ref[...].reshape(m, 3)                 # (M, 3) flattened points

    # ---- backbone: MLP on [patch_point, position]; concat folded into wb1f
    h = jnp.maximum(
        jnp.dot(pc, w("wb1f"), preferred_element_type=jnp.float32) + w("bb1"), 0.0)
    g = jnp.dot(h, w("wb2"), preferred_element_type=jnp.float32) + w("bb2")   # (M, F)

    # ---- voting head: ONE merged (F, 20) matmul; outputs are lane slices
    v = jnp.dot(g, w("wv"), preferred_element_type=jnp.float32) + w("bv")     # (M, 20)
    delta_x = v[:, 0:3]
    delta_f = v[:, 3:3 + DF]
    rho = v[:, 3 + DF:4 + DF]                                                  # (M, 1)

    votes = pc + delta_x                                                       # (M, 3)

    # ---- clustering: per-cloud soft assignment over the N points of each cloud
    w_soft = jax.nn.softmax(rho.reshape(bt, n, 1), axis=1)                     # (BT, N, 1)
    mu_b = jnp.sum(w_soft * votes.reshape(bt, n, 3), axis=1)                   # (BT, 3)
    h_k = jnp.dot(delta_f, w("whk"), preferred_element_type=jnp.float32) + w("bhk")

    # ---- scoring head: lane-stacked [pc | h_k | g] matmul + per-cloud mu term
    mu_term = jnp.dot(mu_b, w("ws1mu"), preferred_element_type=jnp.float32)    # (BT, HS)
    mu_term = jnp.broadcast_to(mu_term[:, None, :], (bt, n, HS)).reshape(m, HS)
    feat = jnp.concatenate([pc, h_k, g], axis=-1)                              # (M, 51)
    s1 = jnp.maximum(
        jnp.dot(feat, w("ws1pkg"), preferred_element_type=jnp.float32)
        + rho * w("ws1rho")                                                    # VPU bcast
        + w("bs1")
        + mu_term,
        0.0)                                                                   # (M, HS)

    # ---- final linear as a lane-axis reduction; lane-dense flat store
    scores = jnp.sum(s1 * w("ws2t"), axis=-1).reshape(1, m) + w("bs2")         # (1, M)
    scores_ref[...] = scores

    # TODO(synk): the PyTorch module also stashes `self.last_predicted_offsets = delta_x`
    # (mutable module state); no functional equivalent, not returned here.


def _pick_bt(b, n):
    """Batch tile from a VMEM activation budget (~1 KiB/point), not a fixed cap.

    At small B this collapses the grid to a single step (best on 1-TC v5e/v6e);
    large B still gets multiple steps once the per-step budget is exceeded.
    """
    per_point_bytes = 1024                 # h:64 + g:32 + v:20 + h_k:16 + feat:51 + s1:32 f32
    act_budget = 4 << 20                   # ~4 MiB of activations per grid step
    cap = max(1, act_budget // (per_point_bytes * n))
    bt = min(b, cap)
    while bt > 1 and b % bt:               # keep the grid exact (no ragged last step)
        bt -= 1
    return bt


def vote3d_anomaly_detector(point_cloud, packed_params):
    """point_cloud: (B, N, 3) f32; packed_params: (PARAM_ROWS, PARAM_COLS) f32.
    Returns (scores (B, N), obj_scores (B,))."""
    Bn, Nn, _ = point_cloud.shape
    bt = _pick_bt(Bn, Nn)
    grid_b = Bn // bt
    m = bt * Nn

    scores_flat = pl.pallas_call(
        detector_kernel,
        out_shape=jax.ShapeDtypeStruct((grid_b, m), jnp.float32),
        grid_spec=pltpu.PrefetchScalarGridSpec(
            num_scalar_prefetch=0,
            grid=(grid_b,),
            in_specs=[
                pl.BlockSpec((bt, Nn, 3), lambda i: (i, 0, 0)),
                pl.BlockSpec((PARAM_ROWS, PARAM_COLS), lambda i: (0, 0)),  # one 40 KiB slab
            ],
            out_specs=pl.BlockSpec((1, m), lambda i: (i, 0)),              # lane-dense scores
        ),
        compiler_params=pltpu.CompilerParams(dimension_semantics=("parallel",)),
    )(point_cloud, packed_params)

    scores = scores_flat.reshape(Bn, Nn)
    # obj computed with plain XLA in the wrapper (removes a lane-width-1 kernel output).
    obj_scores = jnp.max(jax.nn.sigmoid(scores), axis=-1)
    return scores, obj_scores


# --------------------------- pure-JAX reference --------------------------------
def reference_forward(pc, params):
    (wb1, bb1, wb2, bb2, wv, bv, whk, bhk, ws1, bs1, ws2, bs2) = params
    x = jnp.concatenate([pc, pc], axis=-1)                       # (B,N,6)
    h = jnp.maximum(x @ wb1 + bb1, 0.0)
    g = h @ wb2 + bb2                                            # (B,N,F)
    v = g @ wv + bv
    delta_x = v[..., 0:3]
    delta_f = v[..., 3:3 + DF]
    rho = v[..., 3 + DF:4 + DF]                                  # (B,N,1)
    votes_xyz = pc + delta_x
    w = jax.nn.softmax(rho, axis=1)
    mu = jnp.sum(w * votes_xyz, axis=1, keepdims=True) + jnp.zeros_like(votes_xyz)
    h_k = delta_f @ whk + bhk
    feat = jnp.concatenate([pc, mu, rho, h_k, g], axis=-1)
    s1 = jnp.maximum(feat @ ws1 + bs1, 0.0)
    scores = (s1 @ ws2 + bs2)[..., 0]                            # (B,N)
    obj = jnp.max(jax.nn.sigmoid(scores), axis=1)
    return scores, obj


# ------------------------------------ main --------------------------------------
def _init_params(key):
    ks = jax.random.split(key, 12)

    def lin(k, fan_in, fan_out):
        scale = 1.0 / np.sqrt(fan_in)
        return jax.random.uniform(k, (fan_in, fan_out), jnp.float32, -scale, scale)

    wb1 = lin(ks[0], 6, HB);            bb1 = jnp.zeros((1, HB), jnp.float32)
    wb2 = lin(ks[1], HB, F);            bb2 = jnp.zeros((1, F), jnp.float32)
    wv = lin(ks[2], F, 3 + DF + 2);     bv = jnp.zeros((1, 3 + DF + 2), jnp.float32)
    whk = lin(ks[3], DF, H);            bhk = jnp.zeros((1, H), jnp.float32)
    ws1 = lin(ks[4], SF, HS);           bs1 = jnp.zeros((1, HS), jnp.float32)
    ws2 = lin(ks[5], HS, 1);            bs2 = jnp.zeros((1, 1), jnp.float32)
    return (wb1, bb1, wb2, bb2, wv, bv, whk, bhk, ws1, bs1, ws2, bs2)


if __name__ == "__main__":
    key = jax.random.PRNGKey(0)
    k_pc, k_params = jax.random.split(key)
    point_cloud = jax.random.normal(k_pc, (B, N, 3), jnp.float32)
    params = _init_params(k_params)
    packed = pack_params(params)

    scores, obj_scores = jax.jit(vote3d_anomaly_detector)(point_cloud, packed)
    jax.block_until_ready((scores, obj_scores))

    ref_scores, ref_obj = reference_forward(point_cloud, params)
    assert scores.shape == (B, N) and obj_scores.shape == (B,)
    np.testing.assert_allclose(np.asarray(scores), np.asarray(ref_scores), atol=1e-4, rtol=1e-4)
    np.testing.assert_allclose(np.asarray(obj_scores), np.asarray(ref_obj), atol=1e-4, rtol=1e-4)

    print("KERNEL_OK")
</pallas_src>

<mosaic_0001>
module attributes {stable_mosaic.version = 11 : i64} {
  func.func @detector_kernel(%arg0: i32, %arg1: memref<2x16x3xf32, #tpu.memory_space<vmem>>, %arg2: memref<80x128xf32, #tpu.memory_space<vmem>>, %arg3: memref<1x32xf32, #tpu.memory_space<vmem>>) attributes {dimension_semantics = [#tpu.dimension_semantics<parallel>], iteration_bounds = array<i64: 1>, scalar_prefetch = 0 : i64, scratch_operands = 0 : i64, tpu.core_type = #tpu.core_type<tc>, window_params = [{transform_indices = @transform_0, window_bounds = array<i64: 2, 16, 3>}, {pipeline_mode = #tpu.pipeline_mode<synchronous>, transform_indices = @transform_1, window_bounds = array<i64: 80, 128>}, {transform_indices = @transform_2, window_bounds = array<i64: 1, 32>}]} {
    %c0 = arith.constant 0 : index
    %c0_0 = arith.constant 0 : index
    %c0_1 = arith.constant 0 : index
    %0 = vector.load %arg1[%c0, %c0_0, %c0_1] : memref<2x16x3xf32, #tpu.memory_space<vmem>>, vector<2x16x3xf32>
    %1 = vector.shape_cast %0 : vector<2x16x3xf32> to vector<32x3xf32>
    %c8 = arith.constant 8 : index
    %c0_2 = arith.constant 0 : index
    %2 = vector.load %arg2[%c8, %c0_2] : memref<80x128xf32, #tpu.memory_space<vmem>>, vector<3x64xf32>
    %cst = arith.constant dense<0.000000e+00> : vector<32x64xf32>
    %3 = tpu.matmul %1, %2, %cst {dimension_numbers = #tpu.dot_dimension_numbers<[1], [0], [0], [1], [0, 0, 1, 1], [], []>} : vector<32x3xf32>, vector<3x64xf32>, vector<32x64xf32> -> vector<32x64xf32>
    %c0_3 = arith.constant 0 : index
    %c0_4 = arith.constant 0 : index
    %4 = vector.load %arg2[%c0_3, %c0_4] : memref<80x128xf32, #tpu.memory_space<vmem>>, vector<1x64xf32>
    %5 = vector.broadcast %4 : vector<1x64xf32> to vector<32x64xf32>
    %6 = arith.addf %3, %5 : vector<32x64xf32>
    %cst_5 = arith.constant 0.000000e+00 : f32
    %7 = vector.broadcast %cst_5 : f32 to vector<32x64xf32>
    %8 = arith.maximumf %6, %7 : vector<32x64xf32>
    %c16 = arith.constant 16 : index
    %c0_6 = arith.constant 0 : index
    %9 = vector.load %arg2[%c16, %c0_6] : memref<80x128xf32, #tpu.memory_space<vmem>>, vector<64x32xf32>
    %cst_7 = arith.constant dense<0.000000e+00> : vector<32x32xf32>
    %10 = tpu.matmul %8, %9, %cst_7 {dimension_numbers = #tpu.dot_dimension_numbers<[1], [0], [0], [1], [0, 0, 1, 1], [], []>} : vector<32x64xf32>, vector<64x32xf32>, vector<32x32xf32> -> vector<32x32xf32>
    %c0_8 = arith.constant 0 : index
    %c64 = arith.constant 64 : index
    %11 = vector.load %arg2[%c0_8, %c64] : memref<80x128xf32, #tpu.memory_space<vmem>>, vector<1x32xf32>
    %12 = vector.broadcast %11 : vector<1x32xf32> to vector<32x32xf32>
    %13 = arith.addf %10, %12 : vector<32x32xf32>
    %c16_9 = arith.constant 16 : index
    %c32 = arith.constant 32 : index
    %14 = vector.load %arg2[%c16_9, %c32] : memref<80x128xf32, #tpu.memory_space<vmem>>, vector<32x20xf32>
    %cst_10 = arith.constant dense<0.000000e+00> : vector<32x20xf32>
    %15 = tpu.matmul %13, %14, %cst_10 {dimension_numbers = #tpu.dot_dimension_numbers<[1], [0], [0], [1], [0, 0, 1, 1], [], []>} : vector<32x32xf32>, vector<32x20xf32>, vector<32x20xf32> -> vector<32x20xf32>
    %c0_11 = arith.constant 0 : index
    %c96 = arith.constant 96 : index
    %16 = vector.load %arg2[%c0_11, %c96] : memref<80x128xf32, #tpu.memory_space<vmem>>, vector<1x20xf32>
    %17 = vector.broadcast %16 : vector<1x20xf32> to vector<32x20xf32>
    %18 = arith.addf %15, %17 : vector<32x20xf32>
    %19 = vector.extract_strided_slice %18 {offsets = [0, 0], sizes = [32, 3], strides = [1, 1]} : vector<32x20xf32> to vector<32x3xf32>
    %20 = vector.extract_strided_slice %18 {offsets = [0, 3], sizes = [32, 16], strides = [1, 1]} : vector<32x20xf32> to vector<32x16xf32>
    %21 = vector.extract_strided_slice %18 {offsets = [0, 19], sizes = [32, 1], strides = [1, 1]} : vector<32x20xf32> to vector<32x1xf32>
    %22 = arith.addf %1, %19 : vector<32x3xf32>
    %23 = vector.shape_cast %21 : vector<32x1xf32> to vector<2x16x1xf32>
    %cst_12 = arith.constant dense<0xFF800000> : vector<2x1xf32>
    %24 = vector.multi_reduction <maximumf>, %23, %cst_12 [1] : vector<2x16x1xf32> to vector<2x1xf32>
    %cst_13 = arith.constant 0xFF800000 : f32
    %25 = vector.broadcast %cst_13 : f32 to vector<2x1xf32>
    %26 = arith.maximumf %25, %24 : vector<2x1xf32>
    %27 = vector.shape_cast %26 : vector<2x1xf32> to vector<2x1x1xf32>
    %28 = vector.broadcast %27 : vector<2x1x1xf32> to vector<2x16x1xf32>
    %29 = arith.subf %23, %28 : vector<2x16x1xf32>
    %30 = math.exp %29 : vector<2x16x1xf32>
    %cst_14 = arith.constant dense<0.000000e+00> : vector<2x1xf32>
    %31 = vector.multi_reduction <add>, %30, %cst_14 [1] : vector<2x16x1xf32> to vector<2x1xf32>
    %32 = vector.shape_cast %31 : vector<2x1xf32> to vector<2x1x1xf32>
    %33 = vector.broadcast %32 : vector<2x1x1xf32> to vector<2x16x1xf32>
    %34 = arith.divf %30, %33 : vector<2x16x1xf32>
    %35 = vector.shape_cast %22 : vector<32x3xf32> to vector<2x16x3xf32>
    %36 = vector.broadcast %34 : vector<2x16x1xf32> to vector<2x16x3xf32>
    %37 = arith.mulf %36, %35 : vector<2x16x3xf32>
    %cst_15 = arith.constant dense<0.000000e+00> : vector<2x3xf32>
    %38 = vector.multi_reduction <add>, %37, %cst_15 [1] : vector<2x16x3xf32> to vector<2x3xf32>
    %c16_16 = arith.constant 16 : index
    %c52 = arith.constant 52 : index
    %39 = vector.load %arg2[%c16_16, %c52] : memref<80x128xf32, #tpu.memory_space<vmem>>, vector<16x16xf32>
    %cst_17 = arith.constant dense<0.000000e+00> : vector<32x16xf32>
    %40 = tpu.matmul %20, %39, %cst_17 {dimension_numbers = #tpu.dot_dimension_numbers<[1], [0], [0], [1], [0, 0, 1, 1], [], []>} : vector<32x16xf32>, vector<16x16xf32>, vector<32x16xf32> -> vector<32x16xf32>
    %c1 = arith.constant 1 : index
    %c0_18 = arith.constant 0 : index
    %41 = vector.load %arg2[%c1, %c0_18] : memref<80x128xf32, #tpu.memory_space<vmem>>, vector<1x16xf32>
    %42 = vector.broadcast %41 : vector<1x16xf32> to vector<32x16xf32>
    %43 = arith.addf %40, %42 : vector<32x16xf32>
    %c8_19 = arith.constant 8 : index
    %c64_20 = arith.constant 64 : index
    %44 = vector.load %arg2[%c8_19, %c64_20] : memref<80x128xf32, #tpu.memory_space<vmem>>, vector<3x32xf32>
    %cst_21 = arith.constant dense<0.000000e+00> : vector<2x32xf32>
    %45 = tpu.matmul %38, %44, %cst_21 {dimension_numbers = #tpu.dot_dimension_numbers<[1], [0], [0], [1], [0, 0, 1, 1], [], []>} : vector<2x3xf32>, vector<3x32xf32>, vector<2x32xf32> -> vector<2x32xf32>
    %46 = vector.shape_cast %45 : vector<2x32xf32> to vector<2x1x32xf32>
    %47 = vector.shape_cast %46 : vector<2x1x32xf32> to vector<2x1x32xf32>
    %48 = vector.broadcast %47 : vector<2x1x32xf32> to vector<2x16x32xf32>
    %49 = vector.shape_cast %48 : vector<2x16x32xf32> to vector<32x32xf32>
    %50 = tpu.concatenate %1, %43, %13 in 1 : vector<32x3xf32>, vector<32x16xf32>, vector<32x32xf32> -> vector<32x51xf32>
    %c16_22 = arith.constant 16 : index
    %c68 = arith.constant 68 : index
    %51 = vector.load %arg2[%c16_22, %c68] : memref<80x128xf32, #tpu.memory_space<vmem>>, vector<51x32xf32>
    %cst_23 = arith.constant dense<0.000000e+00> : vector<32x32xf32>
    %52 = tpu.matmul %50, %51, %cst_23 {dimension_numbers = #tpu.dot_dimension_numbers<[1], [0], [0], [1], [0, 0, 1, 1], [], []>} : vector<32x51xf32>, vector<51x32xf32>, vector<32x32xf32> -> vector<32x32xf32>
    %c1_24 = arith.constant 1 : index
    %c80 = arith.constant 80 : index
    %53 = vector.load %arg2[%c1_24, %c80] : memref<80x128xf32, #tpu.memory_space<vmem>>, vector<1x32xf32>
    %54 = vector.broadcast %21 : vector<32x1xf32> to vector<32x32xf32>
    %55 = vector.broadcast %53 : vector<1x32xf32> to vector<32x32xf32>
    %56 = arith.mulf %54, %55 : vector<32x32xf32>
    %57 = arith.addf %52, %56 : vector<32x32xf32>
    %c1_25 = arith.constant 1 : index
    %c16_26 = arith.constant 16 : index
    %58 = vector.load %arg2[%c1_25, %c16_26] : memref<80x128xf32, #tpu.memory_space<vmem>>, vector<1x32xf32>
    %59 = vector.broadcast %58 : vector<1x32xf32> to vector<32x32xf32>
    %60 = arith.addf %57, %59 : vector<32x32xf32>
    %61 = arith.addf %60, %49 : vector<32x32xf32>
    %cst_27 = arith.constant 0.000000e+00 : f32
    %62 = vector.broadcast %cst_27 : f32 to vector<32x32xf32>
    %63 = arith.maximumf %61, %62 : vector<32x32xf32>
    %c1_28 = arith.constant 1 : index
    %c48 = arith.constant 48 : index
    %64 = vector.load %arg2[%c1_28, %c48] : memref<80x128xf32, #tpu.memory_space<vmem>>, vector<1x32xf32>
    %65 = vector.broadcast %64 : vector<1x32xf32> to vector<32x32xf32>
    %66 = arith.mulf %63, %65 : vector<32x32xf32>
    %cst_29 = arith.constant dense<0.000000e+00> : vector<32xf32>
    %67 = vector.multi_reduction <add>, %66, %cst_29 [1] : vector<32x32xf32> to vector<32xf32>
    %68 = vector.shape_cast %67 : vector<32xf32> to vector<1x32xf32>
    %c1_30 = arith.constant 1 : index
    %c112 = arith.constant 112 : index
    %69 = vector.load %arg2[%c1_30, %c112] : memref<80x128xf32, #tpu.memory_space<vmem>>, vector<1x1xf32>
    %70 = vector.broadcast %69 : vector<1x1xf32> to vector<1x32xf32>
    %71 = arith.addf %68, %70 : vector<1x32xf32>
    %c0_31 = arith.constant 0 : index
    %c0_32 = arith.constant 0 : index
    %72 = vector.load %arg3[%c0_31, %c0_32] : memref<1x32xf32, #tpu.memory_space<vmem>>, vector<1x32xf32>
    tpu.vector_store %arg3[%c0_31, %c0_32], %71 {strides = array<i32>} : memref<1x32xf32, #tpu.memory_space<vmem>>, vector<1x32xf32>,
    return
  }
  func.func @transform_0(%arg0: i32) -> (i32, i32, i32) {
    %c0_i32 = arith.constant 0 : i32
    %c0_i32_0 = arith.constant 0 : i32
    %c0_i32_1 = arith.constant 0 : i32
    return %arg0, %c0_i32, %c0_i32_0 : i32, i32, i32
  }
  func.func @transform_1(%arg0: i32) -> (i32, i32) {
    %c0_i32 = arith.constant 0 : i32
    %c0_i32_0 = arith.constant 0 : i32
    %c0_i32_1 = arith.constant 0 : i32
    return %c0_i32, %c0_i32_0 : i32, i32
  }
  func.func @transform_2(%arg0: i32) -> (i32, i32) {
    %c0_i32 = arith.constant 0 : i32
    %c0_i32_0 = arith.constant 0 : i32
    return %arg0, %c0_i32 : i32, i32
  }
}

</mosaic_0001>

<bundles_post_ra>
// kernel: vote3d_anomaly_detector.1
= control target key start
LH: loop header
LB: loop body
LE: loop exit
PB: predicated region body
PF: predicated region fallthrough
CT: control target
= control target key end

     0   :  { %7 = vsyncpa [#allocation3], 0  ;;  %s1298_s9 = smov [#allocation2]   ;;  %s1514_s0 = inlined_call_operand.vmem [shape: f32[2,16,3], index: 0, kind: input, shape index: {}]   ;;  %s1515_s1 = inlined_call_operand.hbm [shape: f32[80,128], index: 1, kind: input, shape index: {}]   ;;  %s1516_s2 = inlined_call_operand.vmem [shape: f32[1,32], index: 2, kind: output, shape index: {}]  }
   0x1   :  { %s15_s10 = sshll.u32 %s1298_s9, 4  ;;  %s1274_s13 = scalar_lea.hbm %s1515_s1, 1280  ;;  %s16_s10 = int_to_ptr.vmem [resolvable:$true] %s15_s10 }
   0x2   :  { %p1275_p0 = scmp.ne.s32.totalorder %s1515_s1, %s1274_s13  ;;  %p1278_p1 = scmp.lt.u32.totalorder %s1274_s13, %s1515_s1 }
   0x4   :  { %p1280_p2 = pnand %p1278_p1, %p1275_p0 }
   0x6   :  { %1283 = shalt.err (!%p1280_p2)
}
   0x7   :  { %s1284_s18 = scalar_lea.vmem %s16_s10, 1280  ;;  %p1289_p4 = scmp.lt.s32.totalorder %s16_s10, %s16_s10 }
   0x8   :  { %p1285_p3 = scmp.ne.s32.totalorder %s16_s10, %s1284_s18  ;;  %p1290_p5 = scmp.lt.s32.totalorder %s1284_s18, %s1284_s18 }
   0xa   :  { %p1291_p6 = por %p1290_p5, %p1289_p4 }
   0xc   :  { %p1292_p7 = pnand %p1291_p6, %p1285_p3 }
   0xe   :  { %1295 = shalt.err (!%p1292_p7)
}
   0xf   :  { %s1299_s19 = smov 128   ;;  %s1300_s20 = smov 8  }
  0x10   :  { %21 = dma.hbm_to_vmem [thread:$0]  %s1515_s1, 1280, %s16_s10, [#allocation3], %s1299_s19, %s1299_s19, %s1300_s20  }
  0x11   :  { %1296 = dma.done.wait [#allocation3], 1280  }
  0x12   :  { %1297 = vsyncadd [#allocation3], 4294966016  ;;  %vm48_vm0 = vcmask 1042432   ;;  %vm35_vm1 = vcmask 23552   ;;  %v1345_v0 = vld [vmem:[#allocation2 + $0x8] sm:$0x7] }
  0x13   :  { %v1350_v1 = vld [vmem:[%s1514_s0] sm:$0xff]  ;;  %v1355_v2 = vld [vmem:[%s1514_s0 + $0x8] sm:$0xff]  ;;  %1088 = vmatprep.subr.msk.mxu0 %vm48_vm0, %v1345_v0  ;;  %v1364_v3 = vld [vmem:[%s1514_s0 + $0x10] sm:$0xff]  ;;  %s1302_s30 = smov 96   ;;  %vm153_vm2 = vcmask 523264   ;;  %s1303_s3 = smov 32  }
  0x14   :  { %1090 = vmatprep.mubr.msk.f32.mxu0 %vm35_vm1, %v1350_v1  ;;  %v141_v4 = vld [vmem:[#allocation2 + $0x10] sm:$0xff]  ;;  %1089 = vmatpush3.msk.msra.mxu0 %vm48_vm0, %v1345_v0  ;;  %v142_v5 = vld [vmem:[#allocation2 + $0x18] sm:$0xff]  ;;  %v143_v6 = vld [vmem:[#allocation2 + $0x20] sm:$0xff]  ;;  %s1304_s4 = smov 76   ;;  %vm274_vm3 = vcmask 261120   ;;  %v1305_v49 = vmov 19  }
  0x15   :  { %v144_v7 = vld [vmem:[#allocation2 + $0x28] sm:$0xff]  ;;  %1091 = vmatmul.mubr.msk.f32.vlgmr.msra.gmra.mrb[0].mxu0 %vm35_vm1, %v1355_v2  ;;  %v1167_v8 = vpack.c.bf16 %v142_v5, %v141_v4  ;;  %v1375_v10 = vld [vmem:[%s1514_s0 + $0x18] sm:$0xff]  ;;  %v1377_v11 = vld [vmem:[#allocation2 + $0x30] sm:$0xff]  ;;  %v1385_v18 = vpack.i.bf16 %v142_v5, %v141_v4  ;;  %s1301_s0 = smov 64   ;;  %1243 = vset.pattern.permute.xlu0 %v1305_v49  ;;  %vm376_vm4 = vcmask 162968   ;;  %s1306_s5 = smov 125  }
  0x16   :  { %v1171_v9 = vpack.c.bf16 %v144_v7, %v143_v6  ;;  %1093 = vmatprep.mubr.msk.f32.mxu0 %vm35_vm1, %v1364_v3  ;;  %v1379_v12 = vld [vmem:[#allocation2 + $0x38] sm:$0xff]  ;;  %v147_v14 = vld [vmem:[#allocation2 + $0x40] sm:$0xff]  ;;  %v148_v15 = vld [vmem:[#allocation2 + $0x48] sm:$0xff]  ;;  %v1389_v19 = vpack.i.bf16 %v144_v7, %v143_v6  ;;  %1242 = vset.pattern.permute.xlu1 %v1305_v49  ;;  %s1307_s6 = smov 60   ;;  %s1308_s7 = smov 19   ;;  %vm1310_vm5 = vmmov 0  }
  0x17   :  { %1168 = vmatprep.subr.bf16.mxu1 %v1167_v8  ;;  %v1175_v13 = vpack.c.bf16 %v1379_v12, %v1377_v11  ;;  %v1179_v16 = vpack.c.bf16 %v148_v15, %v147_v14  ;;  %v1018_v17 = vld [vmem:[#allocation2] ss:$0 sm:$0xff]  ;;  %1228 = vrot.lane.b32.xlu0 %v1385_v18, %s1302_s30  ;;  %vm500_vm6 = vcmask 130048   ;;  %vm596_vm7 = vcmask 1041409   ;;  %s1311_s8 = smov 3   ;;  %s1312_s9 = smov 48  }
  0x18   :  { %1170 = vmatpush3.bf16.msra.mxu1 %v1167_v8  ;;  %150 = vrot.lane.b32.xlu1 %v1018_v17, %s1301_s0  ;;  %vm739_vm8 = vcmask 154624   ;;  %vm819_vm9 = vcmask 416768   ;;  %s1313_s10 = smov 80   ;;  %s1314_s11 = smov 112   ;;  %vm994_vm10 = vcmask 130112   ;;  %vm1001_vm11 = vcmask 195712  }
  0x19   :  { %1094 = vmatmul.mubr.msk.f32.gmra.mrb[2].mxu0 %vm35_vm1, %v1375_v10  ;;  %1172 = vmatprep.subr.bf16.mxu1 %v1171_v9  ;;  %vm1008_vm12 = vcmask 261312   ;;  %vm1011_vm13 = vcmask 253952  }
  0x1b   :  { %1233 = vrot.lane.b32.xlu0 %v1389_v19, %s1302_s30 }
  0x1c   :  { %1174 = vmatpush3.bf16.msra.mxu1 %v1171_v9  ;;  %271 = vrot.lane.b32.xlu1 %v1018_v17, %s1303_s3 }
  0x1d   :  { %1176 = vmatprep.subr.bf16.mxu1 %v1175_v13 }
  0x1f   :  { %1238 = vrot.lane.b32.xlu0 %v1385_v18, %s1304_s4 }
  0x20   :  { %1178 = vmatpush3.bf16.msra.mxu1 %v1175_v13 }
  0x21   :  { %1180 = vmatprep.subr.bf16.mxu1 %v1179_v16 }
  0x24   :  { %1182 = vmatpush3.bf16.msra.mxu1 %v1179_v16 }
  0x89   :  { %v1229_v20 = vpop.permute.xlu0 %1228 }
  0x8a   :  { %v1231_v22 = vunpack.i.h.bf16 %v1229_v20  ;;  %v1230_v23 = vunpack.i.l.bf16 %v1229_v20  ;;  %v151_v40 = vpop.permute.xlu1 %150 }
  0x8c   :  { %v1183_v27 = vpack.c.bf16 %v1231_v22, %v1230_v23 }
  0x8d   :  { %v1234_v28 = vpop.permute.xlu0 %1233 }
  0x8e   :  { %v1236_v31 = vunpack.i.h.bf16 %v1234_v28  ;;  %v1235_v32 = vunpack.i.l.bf16 %v1234_v28  ;;  %1184 = vmatprep.subr.bf16.mxu1 %v1183_v27  ;;  %v272_v54 = vpop.permute.xlu1 %271 }
  0x90   :  { %v1187_v37 = vpack.c.bf16 %v1236_v31, %v1235_v32 }
  0x91   :  { %v1239_v50 = vpop.permute.xlu0 %1238 }
  0x92   :  { %v1241_v51 = vunpack.i.h.bf16 %v1239_v50  ;;  %v1240_v52 = vunpack.i.l.bf16 %v1239_v50 }
  0x94   :  { %v1191_v53 = vpack.c.bf16 %v1241_v51, %v1240_v52 }
  0x96   :  { %1192 = vmatprep.subr.bf16.mxu0 %v1191_v53 }
  0x97   :  { %1194 = vmatpush3.bf16.msra.mxu0 %v1191_v53 }
  0xe8   :  { %v1092_v21 = vpop.f32.mrb[0].mxu0 }
  0xe9   :  { %v124_v24 = vadd.f32 %v1092_v21, %v1018_v17  ;;  %v118_v25 = vpop.f32.mrb[1].mxu0 }
  0xea   :  { %v119_v26 = vadd.f32 %v1018_v17, %v118_v25 }
  0xeb   :  { %v138_v33 = vmax.f32 %v124_v24, 0.0 }
  0xec   :  { %v137_v29 = vmax.f32 %v119_v26, 0.0  ;;  %v1095_v30 = vpop.f32.mrb[2].mxu0 }
  0xed   :  { %v134_v34 = vadd.f32 %v1095_v30, %v1018_v17  ;;  %v128_v35 = vpop.f32.mrb[3].mxu0 }
  0xee   :  { %v129_v36 = vadd.f32 %v1018_v17, %v128_v35  ;;  %1112 = vmatprep.mubr.msk.f32.mxu1 %vm153_vm2, %v137_v29 }
  0xef   :  { %1113 = vmatmul.mubr.msk.f32.vlgmr.msra.gmra.mrb[0].mxu1 %vm153_vm2, %v138_v33  ;;  %v140_v39 = vmax.f32 %v134_v34, 0.0 }
  0xf0   :  { %v139_v38 = vmax.f32 %v129_v36, 0.0  ;;  %1186 = vmatpush3.bf16.msra.mxu1 %v1183_v27 }
  0xf1   :  { %1188 = vmatprep.subr.bf16.mxu1 %v1187_v37 }
  0xf2   :  { %1115 = vmatprep.mubr.msk.f32.mxu1 %vm153_vm2, %v139_v38 }
  0xf3   :  { %1116 = vmatmul.mubr.msk.f32.gmra.mrb[2].mxu1 %vm153_vm2, %v140_v39 }
  0xf4   :  { %1190 = vmatpush3.bf16.msra.mxu1 %v1187_v37 }
 0x1c2   :  { %v1114_v41 = vpop.f32.mrb[0].mxu1 }
 0x1c3   :  { %v232_v42 = vpop.f32.mrb[1].mxu1  ;;  %v1399_v44 = vadd.f32 %v1114_v41, %v151_v40 }
 0x1c4   :  { %v1397_v43 = vadd.f32 %v232_v42, %v151_v40 }
 0x1c6   :  { %v1117_v45 = vpop.f32.mrb[2].mxu1  ;;  %1126 = vmatprep.mubr.msk.f32.mxu1 %vm274_vm3, %v1397_v43 }
 0x1c7   :  { %v242_v46 = vpop.f32.mrb[3].mxu1  ;;  %1127 = vmatmul.mubr.msk.f32.vlgmr.msra.gmra.mrb[4].mxu1 %vm274_vm3, %v1399_v44  ;;  %v1407_v48 = vadd.f32 %v1117_v45, %v151_v40 }
 0x1c8   :  { %v1405_v47 = vadd.f32 %v242_v46, %v151_v40 }
 0x1ca   :  { %1129 = vmatprep.mubr.msk.f32.mxu1 %vm274_vm3, %v1405_v47 }
 0x1cb   :  { %1130 = vmatmul.mubr.msk.f32.gmra.mrb[6].mxu1 %vm274_vm3, %v1407_v48 }
 0x29a   :  { %v1128_v55 = vpop.f32.mrb[4].mxu1 }
 0x29b   :  { %v1413_v56 = vadd.f32 %v1128_v55, %v272_v54  ;;  %v353_v57 = vpop.f32.mrb[5].mxu1 }
 0x29c   :  { %v1415_v58 = vadd.f32 %v353_v57, %v272_v54 }
 0x29d   :  { %v378_v59 = vsel %vm376_vm4, %v1413_v56, -inf  ;;  %486 = vrot.lane.b32.xlu0 %v1413_v56, %s1306_s5 }
 0x29e   :  { %v377_v60 = vsel %vm376_vm4, %v1415_v58, -inf  ;;  %v1131_v61 = vpop.f32.mrb[6].mxu1  ;;  %484 = vrot.lane.b32.xlu1 %v1415_v58, %s1306_s5 }
 0x29f   :  { %v379_v62 = vmax.f32 %v377_v60, %v378_v59  ;;  %v1423_v63 = vadd.f32 %v1131_v61, %v272_v54  ;;  %v363_v4 = vpop.f32.mrb[7].mxu1 }
 0x2a0   :  { %v1425_v5 = vadd.f32 %v363_v4, %v272_v54 }
 0x2a1   :  { %v380_v6 = vrot.slane %v379_v62, 4  ;;  %v387_v7 = vsel %vm376_vm4, %v1423_v63, -inf  ;;  %490 = vrot.lane.b32.xlu0 %v1423_v63, %s1306_s5 }
 0x2a2   :  { %v386_v8 = vsel %vm376_vm4, %v1425_v5, -inf  ;;  %488 = vrot.lane.b32.xlu1 %v1425_v5, %s1306_s5 }
 0x2a3   :  { %v381_v9 = vmax.f32 %v379_v62, %v380_v6  ;;  %v388_v13 = vmax.f32 %v386_v8, %v387_v7 }
 0x2a5   :  { %v382_v14 = vrot.slane %v381_v9, 2  ;;  %v389_v15 = vrot.slane %v388_v13, 4 }
 0x2a7   :  { %v383_v16 = vmax.f32 %v381_v9, %v382_v14  ;;  %v390_v17 = vmax.f32 %v388_v13, %v389_v15  ;;  %v1254_v9 = vpack.i.bf16 %v1379_v12, %v1377_v11  ;;  %v750_v14 = vld [vmem:[#allocation2 + $0x40] sm:$0x7] }
 0x2a9   :  { %v384_v20 = vrot.slane %v383_v16, 1  ;;  %v391_v21 = vrot.slane %v390_v17, 2 }
 0x2ab   :  { %v385_v22 = vmax.f32 %v383_v16, %v384_v20  ;;  %v392_v23 = vmax.f32 %v390_v17, %v391_v21 }
 0x2ad   :  { %v395_v24 = vsub.f32 %v1415_v58, %v385_v22  ;;  %v393_v25 = vrot.slane %v392_v23, 1  ;;  %v396_v26 = vsub.f32 %v1413_v56, %v385_v22 }
 0x2af   :  { %v399_v27 = vmul.f32 1.442695, %v395_v24  ;;  %v394_v28 = vmax.f32 %v392_v23, %v393_v25  ;;  %v401_v29 = vmul.f32 1.442695, %v396_v26  ;;  %v374_v26 = vadd.f32 %v1425_v5, %v1364_v3 }
 0x2b1   :  { %1262 = vpow2.f32 %v399_v27  ;;  %v397_v30 = vsub.f32 %v1425_v5, %v394_v28  ;;  %v398_v31 = vsub.f32 %v1423_v63, %v394_v28 }
 0x2b2   :  { %1264 = vpow2.f32 %v401_v29 }
 0x2b3   :  { %v403_v32 = vmul.f32 1.442695, %v397_v30  ;;  %v405_v33 = vmul.f32 1.442695, %v398_v31  ;;  %v375_v31 = vadd.f32 %v1423_v63, %v1375_v10 }
 0x2b5   :  { %1266 = vpow2.f32 %v403_v32 }
 0x2b6   :  { %1268 = vpow2.f32 %v405_v33 }
 0x2bb   :  { %v1263_v34 = vpop.eup %1262 }
 0x2bc   :  { %v1265_v35 = vpop.eup %1264  ;;  %v407_v36 = vsel %vm376_vm4, %v1263_v34, 0.0 }
 0x2bd   :  { %v408_v37 = vsel %vm376_vm4, %v1265_v35, 0.0 }
 0x2be   :  { %v409_v38 = vadd.f32 %v408_v37, %v407_v36 }
 0x2bf   :  { %v1267_v39 = vpop.eup %1266 }
 0x2c0   :  { %v1269_v40 = vpop.eup %1268  ;;  %v410_v41 = vrot.slane %v409_v38, 4  ;;  %v416_v42 = vsel %vm376_vm4, %v1267_v39, 0.0 }
 0x2c1   :  { %v417_v45 = vsel %vm376_vm4, %v1269_v40, 0.0 }
 0x2c2   :  { %v411_v46 = vadd.f32 %v410_v41, %v409_v38  ;;  %v418_v49 = vadd.f32 %v417_v45, %v416_v42 }
 0x2c4   :  { %v412_v50 = vrot.slane %v411_v46, 2  ;;  %v419_v51 = vrot.slane %v418_v49, 4 }
 0x2c6   :  { %v413_v52 = vadd.f32 %v412_v50, %v411_v46  ;;  %v420_v53 = vadd.f32 %v419_v51, %v418_v49 }
 0x2c8   :  { %v414_v54 = vrot.slane %v413_v52, 1  ;;  %v421_v55 = vrot.slane %v420_v53, 2 }
 0x2ca   :  { %v415_v57 = vadd.f32 %v414_v54, %v413_v52  ;;  %v422_v59 = vadd.f32 %v421_v55, %v420_v53 }
 0x2cc   :  { %1270 = vrcp.f32 %v415_v57  ;;  %v423_v60 = vrot.slane %v422_v59, 1 }
 0x2ce   :  { %v424_v61 = vadd.f32 %v423_v60, %v422_v59 }
 0x2d0   :  { %1272 = vrcp.f32 %v424_v61 }
 0x2d6   :  { %v1271_v62 = vpop.eup %1270 }
 0x2d7   :  { %v427_v4 = vmul.f32 %v1271_v62, %v1265_v35  ;;  %v426_v6 = vmul.f32 %v1271_v62, %v1263_v34 }
 0x2d9   :  { %438 = vperm.xlu0 %1243, %v427_v4   ;;  %433 = vperm.xlu1 %1242, %v426_v6  }
 0x2da   :  { %v1273_v7 = vpop.eup %1272 }
 0x2db   :  { %v429_v8 = vmul.f32 %v1273_v7, %v1267_v39  ;;  %v430_v13 = vmul.f32 %v1273_v7, %v1269_v40 }
 0x2dd   :  { %443 = vperm.xlu1 %1242, %v429_v8   ;;  %1245 = vrot.lane.b32.xlu0 %v1385_v18, %s1307_s6  ;;  %v1309_v18 = vmov 0.0   ;;  %v1032_v8 = vld [vmem:[#allocation2 + $0x1] ss:$0 sm:$0xff] }
 0x2de   :  { %1142 = vmatprep.subr.mxu1 %v1309_v18  ;;  %1144 = vmatprep.mubr.msk.f32.mxu1 %vm1310_vm5, %v1309_v18 }
 0x2e1   :  { %448 = vperm.xlu1 %1242, %v430_v13   ;;  %1255 = vrot.lane.b32.xlu0 %v1254_v9, %s1307_s6 }
 0x2e5   :  { %1250 = vrot.lane.b32.xlu1 %v1389_v19, %s1307_s6  ;;  %795 = vrot.lane.b32.xlu0 %v750_v14, %s1307_s6 }
 0x2e9   :  { %723 = vrot.lane.b32.xlu1 %v1397_v43, %s1308_s7  ;;  %598 = vrot.lane.b32.xlu0 %v1345_v0, %s1301_s0  ;;  %v373_v43 = vadd.f32 %v1413_v56, %v1355_v2  ;;  %v372_v0 = vadd.f32 %v1415_v58, %v1350_v1 }
 0x2ed   :  { %725 = vrot.lane.b32.xlu1 %v1399_v44, %s1308_s7 }
 0x30f   :  { %v487_v11 = vpop.permute.xlu0 %486 }
 0x310   :  { %v485_v12 = vpop.permute.xlu1 %484 }
 0x311   :  { %1136 = vmatprep.mubr.msk.f32.mxu0 %vm500_vm6, %v485_v12 }
 0x312   :  { %1137 = vmatmul.mubr.msk.f32.vlgmr.msra.gmra.mrb[4].mxu0 %vm500_vm6, %v487_v11 }
 0x313   :  { %v491_v15 = vpop.permute.xlu0 %490 }
 0x314   :  { %v489_v19 = vpop.permute.xlu1 %488 }
 0x315   :  { %1139 = vmatprep.mubr.msk.f32.mxu0 %vm500_vm6, %v489_v19 }
 0x316   :  { %1140 = vmatmul.mubr.msk.f32.gmra.mrb[6].mxu0 %vm500_vm6, %v491_v15 }
 0x358   :  { %v439_v44 = vpop.permute.xlu0 %438  ;;  %v434_v16 = vpop.permute.xlu1 %433 }
 0x359   :  { %v452_v17 = vmul.f32 %v439_v44, %v373_v43  ;;  %v451_v20 = vmul.f32 %v434_v16, %v372_v0 }
 0x35b   :  { %v456_v21 = vsel %vm35_vm1, %v452_v17, 0.0  ;;  %v455_v22 = vsel %vm35_vm1, %v451_v20, 0.0 }
 0x35c   :  { %v457_v23 = vadd.f32 %v456_v21, %v455_v22  ;;  %v444_v24 = vpop.permute.xlu1 %443  ;;  %v1246_v25 = vpop.permute.xlu0 %1245 }
 0x35d   :  { %v1248_v27 = vunpack.i.h.bf16 %v1246_v25  ;;  %v1247_v28 = vunpack.i.l.bf16 %v1246_v25  ;;  %v453_v30 = vmul.f32 %v444_v24, %v374_v26  ;;  %v678_v25 = vlaneseq }
 0x35e   :  { %v458_v29 = vrot.slane %v457_v23, 4 }
 0x35f   :  { %v1195_v32 = vpack.c.bf16 %v1248_v27, %v1247_v28  ;;  %v464_v37 = vsel %vm35_vm1, %v453_v30, 0.0  ;;  %v1488_v26 = vshrl.u32 %v678_v25, 7  ;;  %v1490_v27 = vld [vmem:[#allocation2 + $0x1] sm:$0x1] }
 0x360   :  { %v459_v33 = vadd.f32 %v458_v29, %v457_v23  ;;  %v449_v34 = vpop.permute.xlu1 %448  ;;  %v1256_v35 = vpop.permute.xlu0 %1255 }
 0x361   :  { %v454_v36 = vmul.f32 %v449_v34, %v375_v31  ;;  %1196 = vmatprep.subr.bf16.mxu0 %v1195_v32  ;;  %v1258_v39 = vunpack.i.h.bf16 %v1256_v35  ;;  %v1257_v40 = vunpack.i.l.bf16 %v1256_v35  ;;  %v1493_v28 = vsub.s32 0, %v1488_v26 }
 0x362   :  { %1198 = vmatpush3.bf16.msra.mxu0 %v1195_v32  ;;  %v460_v41 = vrot.slane %v459_v33, 2 }
 0x363   :  { %v465_v38 = vsel %vm35_vm1, %v454_v36, 0.0  ;;  %v1203_v53 = vpack.c.bf16 %v1258_v39, %v1257_v40  ;;  %v1315_v36 = vmov 112  }
 0x364   :  { %v466_v42 = vadd.f32 %v465_v38, %v464_v37  ;;  %v1251_v45 = vpop.permute.xlu1 %1250  ;;  %v796_v46 = vpop.permute.xlu0 %795  ;;  %v461_v54 = vadd.f32 %v460_v41, %v459_v33  ;;  %v1316_v37 = vmov 1966171168  }
 0x365   :  { %v1253_v49 = vunpack.i.h.bf16 %v1251_v45  ;;  %v1252_v50 = vunpack.i.l.bf16 %v1251_v45  ;;  %v676_v38 = vunpack.c.l.s4 %v1316_v37 }
 0x366   :  { %v467_v51 = vrot.slane %v466_v42, 4  ;;  %v462_v60 = vrot.slane %v461_v54, 1 }
 0x367   :  { %v1199_v52 = vpack.c.bf16 %v1253_v49, %v1252_v50  ;;  %v677_v39 = vunpack.c.0.s8 %v676_v38 }
 0x368   :  { %v468_v55 = vadd.f32 %v467_v51, %v466_v42  ;;  %v599_v57 = vpop.permute.xlu0 %598  ;;  %v463_v4 = vadd.f32 %v462_v60, %v461_v54  ;;  %v724_v44 = vpop.permute.xlu1 %723 }
 0x369   :  { %1143 = vmatpush3.msk.msra.mxu1 %vm48_vm0, %v599_v57  ;;  %1200 = vmatprep.subr.bf16.mxu0 %v1199_v52  ;;  %v680_v41 = vsub.s32 %v677_v39, %v1488_v26 }
 0x36a   :  { %v469_v59 = vrot.slane %v468_v55, 2  ;;  %1202 = vmatpush3.bf16.msra.mxu0 %v1199_v52 }
 0x36b   :  { %1204 = vmatprep.subr.bf16.mxu0 %v1203_v53 }
 0x36c   :  { %v470_v61 = vadd.f32 %v469_v59, %v468_v55  ;;  %v726_v16 = vpop.permute.xlu1 %725 }
 0x36e   :  { %v471_v62 = vrot.slane %v470_v61, 1  ;;  %1206 = vmatpush3.bf16.msra.mxu0 %v1203_v53 }
 0x36f   :  { %1159 = vmatprep.subr.msk.mxu0 %vm48_vm0, %v796_v46 }
 0x370   :  { %v472_v6 = vadd.f32 %v471_v62, %v470_v61 }
 0x372   :  { %v597_v7 = vsel %vm596_vm7, %v472_v6, %v463_v4  ;;  %1160 = vmatpush3.msk.msra.mxu0 %vm48_vm0, %v796_v46 }
 0x373   :  { %1145 = vmatmul.mubr.msk.f32.vlgmr.msra.gmra.mrb[8].mxu1 %vm35_vm1, %v597_v7 }
 0x3e5   :  { %v1138_v9 = vpop.f32.mrb[4].mxu0 }
 0x3e6   :  { %v581_v13 = vadd.f32 %v1138_v9, %v1032_v8  ;;  %v575_v14 = vpop.f32.mrb[5].mxu0 }
 0x3e7   :  { %v576_v18 = vadd.f32 %v1032_v8, %v575_v14 }
 0x3e8   :  { %713 = vrot.lane.b32.xlu0 %v581_v13, %s1311_s8 }
 0x3e9   :  { %v1141_v11 = vpop.f32.mrb[6].mxu0  ;;  %711 = vrot.lane.b32.xlu1 %v576_v18, %s1311_s8 }
 0x3ea   :  { %v591_v12 = vadd.f32 %v1141_v11, %v1032_v8  ;;  %v585_v19 = vpop.f32.mrb[7].mxu0 }
 0x3eb   :  { %v586_v15 = vadd.f32 %v1032_v8, %v585_v19 }
 0x3ec   :  { %717 = vrot.lane.b32.xlu0 %v591_v12, %s1311_s8 }
 0x3ed   :  { %715 = vrot.lane.b32.xlu1 %v586_v15, %s1311_s8 }
 0x3f0   :  { %729 = vrot.lane.b32.xlu0 %v1407_v48, %s1308_s7 }
 0x3f1   :  { %727 = vrot.lane.b32.xlu1 %v1405_v47, %s1308_s7 }
 0x3f4   :  { %757 = vperm.xlu0 %1243, %v1413_v56  }
 0x3f5   :  { %753 = vperm.xlu1 %1242, %v1415_v58  }
 0x3f8   :  { %765 = vperm.xlu0 %1243, %v1423_v63  }
 0x3f9   :  { %761 = vperm.xlu1 %1242, %v1425_v5  }
 0x3fc   :  { %1259 = vset.pattern.permute.xlu0 %v1315_v36 }
 0x446   :  { %v670_v43 = vpop.f32.mrb[8].mxu1 }
 0x447   :  { %v1146_v0 = vpop.f32.mrb[9].mxu1  ;;  %v681_v42 = vrot.slane %v670_v43, %v680_v41 }
 0x449   :  { %v689_v49 = vrot.slane %v681_v42, %v680_v41  ;;  %v682_v54 = vcombine.high %v681_v42, %v681_v42 }
 0x44b   :  { %v700_v59 = vrot.slane %v689_v49, %v1493_v28  ;;  %v696_v4 = vrot.slane %v682_v54, %v680_v41 }
 0x44d   :  { %v704_v19 = vrot.slane %v696_v4, %v1493_v28 }
 0x45a   :  { %v714_v17 = vpop.permute.xlu0 %713 }
 0x45b   :  { %v736_v48 = vsel %vm35_vm1, %v1355_v2, %v714_v17  ;;  %v712_v20 = vpop.permute.xlu1 %711 }
 0x45c   :  { %v735_v47 = vsel %vm35_vm1, %v1350_v1, %v712_v20  ;;  %v741_v58 = vsel %vm739_vm8, %v736_v48, %v726_v16 }
 0x45d   :  { %v740_v56 = vsel %vm739_vm8, %v735_v47, %v724_v44 }
 0x45e   :  { %v718_v63 = vpop.permute.xlu0 %717  ;;  %1161 = vmatprep.mubr.msk.f32.mxu0 %vm819_vm9, %v740_v56 }
 0x45f   :  { %v716_v5 = vpop.permute.xlu1 %715  ;;  %1162 = vmatmul.mubr.msk.f32.vlgmr.msra.gmra.mrb[8].mxu0 %vm819_vm9, %v741_v58  ;;  %v738_v2 = vsel %vm35_vm1, %v1375_v10, %v718_v63 }
 0x460   :  { %v737_v22 = vsel %vm35_vm1, %v1364_v3, %v716_v5  ;;  %v771_v3 = vrot.slane %v1490_v27, %v1493_v28 }
 0x462   :  { %v730_v21 = vpop.permute.xlu0 %729 }
 0x463   :  { %v728_v23 = vpop.permute.xlu1 %727  ;;  %v743_v1 = vsel %vm739_vm8, %v738_v2, %v730_v21  ;;  %v1317_v21 = vmov 0  }
 0x464   :  { %v742_v24 = vsel %vm739_vm8, %v737_v22, %v728_v23  ;;  %1260 = vset.pattern.permute.xlu1 %v1317_v21 }
 0x465   :  { %1164 = vmatprep.mubr.msk.f32.mxu0 %vm819_vm9, %v742_v24 }
 0x466   :  { %1165 = vmatmul.mubr.msk.f32.gmra.mrb[10].mxu0 %vm819_vm9, %v743_v1 }
 0x473   :  { %v758_v29 = vpop.permute.xlu0 %757 }
 0x474   :  { %v773_v10 = vmul.f32 %v771_v3, %v758_v29  ;;  %v754_v30 = vpop.permute.xlu1 %753 }
 0x475   :  { %v772_v31 = vmul.f32 %v771_v3, %v754_v30 }
 0x476   :  { %809 = vrot.lane.b32.xlu0 %v773_v10, %s1312_s9 }
 0x477   :  { %v766_v32 = vpop.permute.xlu0 %765  ;;  %807 = vrot.lane.b32.xlu1 %v772_v31, %s1312_s9 }
 0x478   :  { %v775_v33 = vmul.f32 %v771_v3, %v766_v32  ;;  %v762_v34 = vpop.permute.xlu1 %761 }
 0x479   :  { %v774_v35 = vmul.f32 %v771_v3, %v762_v34 }
 0x47a   :  { %813 = vrot.lane.b32.xlu0 %v775_v33, %s1312_s9 }
 0x47b   :  { %811 = vrot.lane.b32.xlu1 %v774_v35, %s1312_s9 }
 0x47e   :  { %935 = vrot.lane.b32.xlu0 %v771_v3, %s1313_s10 }
 0x47f   :  { %920 = vrot.lane.b32.xlu1 %v771_v3, %s1314_s11 }
 0x4e8   :  { %v810_v45 = vpop.permute.xlu0 %809 }
 0x4e9   :  { %v808_v40 = vpop.permute.xlu1 %807 }
 0x4ec   :  { %v814_v55 = vpop.permute.xlu0 %813 }
 0x4ed   :  { %v812_v46 = vpop.permute.xlu1 %811 }
 0x4f0   :  { %v936_v6 = vpop.permute.xlu0 %935 }
 0x4f1   :  { %v921_v51 = vpop.permute.xlu1 %920 }
 0x532   :  { %v1163_v50 = vpop.f32.mrb[8].mxu0 }
 0x533   :  { %v906_v52 = vadd.f32 %v1163_v50, %v810_v45  ;;  %v900_v53 = vpop.f32.mrb[9].mxu0 }
 0x534   :  { %v901_v57 = vadd.f32 %v900_v53, %v808_v40 }
 0x535   :  { %v924_v60 = vadd.f32 %v921_v51, %v906_v52 }
 0x536   :  { %v923_v61 = vadd.f32 %v921_v51, %v901_v57 }
 0x537   :  { %v928_v62 = vadd.f32 %v924_v60, %v700_v59 }
 0x538   :  { %v927_v7 = vadd.f32 %v923_v61, %v700_v59 }
 0x539   :  { %v1166_v8 = vpop.f32.mrb[10].mxu0  ;;  %v932_v9 = vmax.f32 %v928_v62, 0.0 }
 0x53a   :  { %v916_v13 = vadd.f32 %v1166_v8, %v814_v55  ;;  %v910_v14 = vpop.f32.mrb[11].mxu0  ;;  %v931_v18 = vmax.f32 %v927_v7, 0.0 }
 0x53b   :  { %v911_v11 = vadd.f32 %v910_v14, %v812_v46  ;;  %v939_v12 = vmul.f32 %v936_v6, %v932_v9 }
 0x53c   :  { %v926_v15 = vadd.f32 %v921_v51, %v916_v13  ;;  %v938_v43 = vmul.f32 %v936_v6, %v931_v18 }
 0x53d   :  { %v925_v0 = vadd.f32 %v921_v51, %v911_v11  ;;  %v945_v44 = vsel %vm274_vm3, %v939_v12, 0.0 }
 0x53e   :  { %v930_v16 = vadd.f32 %v926_v15, %v704_v19  ;;  %946 = vadd.xlane.f32.xlu0 %v945_v44  ;;  %v942_v17 = vsel %vm274_vm3, %v938_v43, 0.0 }
 0x53f   :  { %v929_v48 = vadd.f32 %v925_v0, %v704_v19  ;;  %943 = vadd.xlane.f32.xlu1 %v942_v17 }
 0x540   :  { %v934_v20 = vmax.f32 %v930_v16, 0.0 }
 0x541   :  { %v933_v47 = vmax.f32 %v929_v48, 0.0 }
 0x542   :  { %v941_v56 = vmul.f32 %v936_v6, %v934_v20 }
 0x543   :  { %v940_v58 = vmul.f32 %v936_v6, %v933_v47 }
 0x544   :  { %v951_v63 = vsel %vm274_vm3, %v941_v56, 0.0 }
 0x545   :  { %952 = vadd.xlane.f32.xlu1 %v951_v63  ;;  %v948_v5 = vsel %vm274_vm3, %v940_v58, 0.0 }
 0x546   :  { %949 = vadd.xlane.f32.xlu0 %v948_v5 }
 0x55c   :  { %956 = vperm.xlu0 %1259, %v1490_v27   ;;  %v984_v27 = vand.u32 127, %v678_v25 }
 0x55e   :  { %v996_v33 = vadd.s32 4294967280, %v984_v27  ;;  %v989_v34 = vadd.s32 4294967288, %v984_v27  ;;  %v987_v36 = vsub.s32 %v984_v27, %v1488_v26  ;;  %v1003_v37 = vadd.s32 4294967272, %v984_v27 }
 0x560   :  { %1261 = vset.pattern.permute.xlu0 %v1317_v21  ;;  %v992_v38 = vsub.s32 %v989_v34, %v1488_v26  ;;  %v1006_v41 = vsub.s32 %v1003_v37, %v1488_v26 }
 0x5cb   :  { %v947_v22 = vpop.xlane.xlu0 %946 }
 0x5cc   :  { %v944_v3 = vpop.xlane.xlu1 %943 }
 0x5d2   :  { %v953_v30 = vpop.xlane.xlu1 %952 }
 0x5d3   :  { %v950_v23 = vpop.xlane.xlu0 %949 }
 0x5db   :  { %v957_v2 = vpop.permute.xlu0 %956 }
 0x5dc   :  { %v961_v24 = vrot.slane %v957_v2, %v1493_v28  ;;  %v999_v28 = vsub.s32 %v996_v33, %v1488_v26 }
 0x5de   :  { %v964_v1 = vadd.f32 %v961_v24, %v947_v22  ;;  %v963_v29 = vadd.f32 %v961_v24, %v944_v3  ;;  %v965_v10 = vadd.f32 %v961_v24, %v950_v23  ;;  %v966_v31 = vadd.f32 %v961_v24, %v953_v30 }
 0x5e0   :  { %975 = vperm.xlu1 %1260, %v964_v1  }
 0x5e4   :  { %972 = vperm.xlu1 %1260, %v963_v29  }
 0x5e8   :  { %978 = vperm.xlu1 %1260, %v965_v10  }
 0x5ec   :  { %981 = vperm.xlu1 %1260, %v966_v31  }
 0x65f   :  { %v976_v32 = vpop.permute.xlu1 %975 }
 0x660   :  { %v993_v45 = vrot.slane %v976_v32, %v992_v38 }
 0x663   :  { %v973_v35 = vpop.permute.xlu1 %972 }
 0x664   :  { %v988_v40 = vrot.slane %v973_v35, %v987_v36 }
 0x666   :  { %v995_v46 = vsel %vm994_vm10, %v993_v45, %v988_v40 }
 0x667   :  { %v979_v39 = vpop.permute.xlu1 %978 }
 0x668   :  { %v1000_v42 = vrot.slane %v979_v39, %v999_v28 }
 0x66a   :  { %v1002_v50 = vsel %vm1001_vm11, %v1000_v42, %v995_v46 }
 0x66b   :  { %v982_v25 = vpop.permute.xlu1 %981 }
 0x66c   :  { %v1007_v49 = vrot.slane %v982_v25, %v1006_v41 }
 0x66e   :  { %v1009_v51 = vsel %vm1008_vm12, %v1007_v49, %v1002_v50 }
 0x66f   :  { %1012 = vst.msk [vmem:[%s1516_s2] sm:$0x1] %vm1011_vm13, %v1009_v51 }
 0x670   :  { %1017 = vsyncpa [#allocation3], 1 }

</bundles_post_ra>
